<compile_context>
chip_gen: v5e
topology: v5e:2x2
jax: 0.10.0
libtpu: 0.0.40
codegen_flags: <defaults>
</compile_context>

<pallas_src>
import functools
import math

import jax
import jax.numpy as jnp
from jax.experimental import pallas as pl
from jax.experimental.pallas import tpu as pltpu

DROPOUT_P = 0.2  # module-level `dropout` in transformer/train.py


def _u32_keep_threshold(p: float) -> int:
    """keep an element iff its u32 random bits < round((1-p) * 2^32)."""
    t = int(round((1.0 - float(p)) * 4294967296.0))
    return max(0, min(t, 4294967295))


def _pe_dropout_prng_kernel(seed_ref, x_ref, pe_ref, o_ref, *, threshold, scale):
    # TPU path: x_ref (TS,B,D), pe_ref (TS,1,D), seed_ref (1,) in SMEM.
    y = x_ref[...] + pe_ref[...]                       # broadcast over batch
    pltpu.prng_seed(seed_ref[0] + pl.program_id(0))    # per-tile stream
    bits = pltpu.bitcast(pltpu.prng_random_bits(y.shape), jnp.uint32)
    keep = bits < jnp.uint32(threshold)
    y = y * jnp.where(keep, jnp.float32(scale), jnp.float32(0.0)).astype(y.dtype)
    o_ref[...] = y.astype(o_ref.dtype)


def _pe_dropout_bits_kernel(x_ref, pe_ref, bits_ref, o_ref, *, threshold, scale):
    # Portable path (CPU interpret / non-TPU backends): bits supplied by wrapper.
    y = x_ref[...] + pe_ref[...]
    keep = bits_ref[...] < jnp.uint32(threshold)
    y = y * jnp.where(keep, jnp.float32(scale), jnp.float32(0.0)).astype(y.dtype)
    o_ref[...] = y.astype(o_ref.dtype)


def make_pe_buffer(d_model: int, max_len: int = 5000) -> jnp.ndarray:
    """Same construction as PositionalEncoding.__init__ (plain JAX setup glue)."""
    position = jnp.arange(max_len, dtype=jnp.float32)[:, None]
    div_term = jnp.exp(
        jnp.arange(0, d_model, 2, dtype=jnp.float32) * (-math.log(10000.0) / d_model)
    )
    pe = jnp.zeros((max_len, 1, d_model), jnp.float32)
    pe = pe.at[:, 0, 0::2].set(jnp.sin(position * div_term))
    pe = pe.at[:, 0, 1::2].set(jnp.cos(position * div_term))
    return pe


def _choose_seq_tile(S, B, D, itemsize, target_bytes=2 * 1024 * 1024):
    """Pick a sequence tile so double-buffered in+out blocks fit default scoped VMEM."""
    row_bytes = max(1, B * D * itemsize)
    ts = int(min(S, max(1, target_bytes // row_bytes)))
    if ts >= 8:
        ts -= ts % 8  # keep tile boundaries tidy (not required for the 3rd-to-last dim)
    return max(1, ts)


def positional_encoding_forward(x, pe, *, p=DROPOUT_P, seed=0, train=True):
    """x: [seq_len, batch, d_model]; returns dropout(x + pe[:seq_len])."""
    S, B, D = x.shape
    pe_slice = pe[:S].astype(x.dtype)  # (S, 1, D), kept in the compute dtype

    if (not train) or p <= 0.0:
        # Eval / p==0: trivial fused add; no kernel launch or dtype round-trip.
        return x + pe_slice

    TS = _choose_seq_tile(S, B, D, x.dtype.itemsize)
    grid = (pl.cdiv(S, TS),)
    threshold = _u32_keep_threshold(p)
    scale = 1.0 / (1.0 - float(p))

    x_spec = pl.BlockSpec((TS, B, D), lambda i: (i, 0, 0))
    pe_spec = pl.BlockSpec((TS, 1, D), lambda i: (i, 0, 0))
    out_spec = pl.BlockSpec((TS, B, D), lambda i: (i, 0, 0))
    out_shape = jax.ShapeDtypeStruct((S, B, D), x.dtype)

    if jax.default_backend() == "tpu":
        # In-kernel hardware PRNG: no extra HBM stream for the mask.
        kernel = functools.partial(
            _pe_dropout_prng_kernel, threshold=threshold, scale=scale
        )
        seed_arr = jnp.asarray([seed], dtype=jnp.int32)
        return pl.pallas_call(
            kernel,
            out_shape=out_shape,
            grid=grid,
            in_specs=[
                pl.BlockSpec(memory_space=pltpu.MemorySpace.SMEM),  # seed scalar
                x_spec,
                pe_spec,
            ],
            out_specs=out_spec,
            compiler_params=pltpu.CompilerParams(
                dimension_semantics=("parallel",)
            ),
        )(seed_arr, x, pe_slice)

    # Non-TPU backend (e.g. CPU interpret): hardware PRNG primitives are not
    # available, so draw the random bits in the wrapper and stream them in.
    bits = jax.random.bits(jax.random.PRNGKey(seed), (S, B, D), dtype=jnp.uint32)
    bits_spec = pl.BlockSpec((TS, B, D), lambda i: (i, 0, 0))
    kernel = functools.partial(
        _pe_dropout_bits_kernel, threshold=threshold, scale=scale
    )
    return pl.pallas_call(
        kernel,
        out_shape=out_shape,
        grid=grid,
        in_specs=[x_spec, pe_spec, bits_spec],
        out_specs=out_spec,
    )(x, pe_slice, bits)


if __name__ == "__main__":
    key = jax.random.PRNGKey(0)
    seq_len, batch, d_model = 8, 2, 32
    x = jax.random.normal(key, (seq_len, batch, d_model), dtype=jnp.float32)

    pe = make_pe_buffer(d_model, max_len=5000)

    # Training path (dropout active) — runs the Pallas kernel.
    out = positional_encoding_forward(x, pe, p=DROPOUT_P, seed=0, train=True)
    out = jax.block_until_ready(out)
    assert out.shape == (seq_len, batch, d_model)

    # Every output element must be either 0 (dropped) or (x+pe)/(1-p) (kept).
    base = x + pe[:seq_len]
    scaled = base / (1.0 - DROPOUT_P)
    is_drop = jnp.isclose(out, 0.0, atol=1e-6)
    is_keep = jnp.isclose(out, scaled, rtol=1e-5, atol=1e-5)
    assert bool(jnp.all(is_drop | is_keep)), "dropout output not in {0, scaled(x+pe)}"

    # Eval path (identity dropout) checked against the reference add.
    out_eval = positional_encoding_forward(x, pe, p=DROPOUT_P, seed=0, train=False)
    out_eval = jax.block_until_ready(out_eval)
    assert jnp.allclose(out_eval, base, atol=1e-6), "PE add mismatch"

    print("KERNEL_OK")
</pallas_src>

<mosaic_0001>
module attributes {stable_mosaic.version = 11 : i64} {
  func.func @_pe_dropout_bits_kernel(%arg0: i32, %arg1: memref<8x2x32xf32, #tpu.memory_space<vmem>>, %arg2: memref<8x1x32xf32, #tpu.memory_space<vmem>>, %arg3: memref<8x2x32xi32, #tpu.memory_space<vmem>>, %arg4: memref<8x2x32xf32, #tpu.memory_space<vmem>>) attributes {dimension_semantics = [#tpu.dimension_semantics<arbitrary>], iteration_bounds = array<i64: 1>, scalar_prefetch = 0 : i64, scratch_operands = 0 : i64, tpu.core_type = #tpu.core_type<tc>, window_params = [{transform_indices = @transform_0, window_bounds = array<i64: 8, 2, 32>}, {transform_indices = @transform_1, window_bounds = array<i64: 8, 1, 32>}, {transform_indices = @transform_2, window_bounds = array<i64: 8, 2, 32>}, {transform_indices = @transform_3, window_bounds = array<i64: 8, 2, 32>}]} {
    %c0 = arith.constant 0 : index
    %c0_0 = arith.constant 0 : index
    %c0_1 = arith.constant 0 : index
    %0 = vector.load %arg1[%c0, %c0_0, %c0_1] : memref<8x2x32xf32, #tpu.memory_space<vmem>>, vector<8x2x32xf32>
    %c0_2 = arith.constant 0 : index
    %c0_3 = arith.constant 0 : index
    %c0_4 = arith.constant 0 : index
    %1 = vector.load %arg2[%c0_2, %c0_3, %c0_4] : memref<8x1x32xf32, #tpu.memory_space<vmem>>, vector<8x1x32xf32>
    %2 = vector.broadcast %1 : vector<8x1x32xf32> to vector<8x2x32xf32>
    %3 = arith.addf %0, %2 : vector<8x2x32xf32>
    %c0_5 = arith.constant 0 : index
    %c0_6 = arith.constant 0 : index
    %c0_7 = arith.constant 0 : index
    %4 = vector.load %arg3[%c0_5, %c0_6, %c0_7] : memref<8x2x32xi32, #tpu.memory_space<vmem>>, vector<8x2x32xi32>
    %c-858993459_i32 = arith.constant -858993459 : i32
    %5 = vector.broadcast %c-858993459_i32 : i32 to vector<8x2x32xi32>
    %6 = arith.cmpi ult, %4, %5 : vector<8x2x32xi32>
    %cst = arith.constant 1.250000e+00 : f32
    %cst_8 = arith.constant 0.000000e+00 : f32
    %7 = vector.broadcast %cst : f32 to vector<8x2x32xf32>
    %8 = vector.broadcast %cst_8 : f32 to vector<8x2x32xf32>
    %9 = arith.select %6, %7, %8 : vector<8x2x32xi1>, vector<8x2x32xf32>
    %10 = arith.mulf %3, %9 : vector<8x2x32xf32>
    %c0_9 = arith.constant 0 : index
    %c0_10 = arith.constant 0 : index
    %c0_11 = arith.constant 0 : index
    %11 = vector.load %arg4[%c0_9, %c0_10, %c0_11] : memref<8x2x32xf32, #tpu.memory_space<vmem>>, vector<8x2x32xf32>
    tpu.vector_store %arg4[%c0_9, %c0_10, %c0_11], %10 {strides = array<i32>} : memref<8x2x32xf32, #tpu.memory_space<vmem>>, vector<8x2x32xf32>,
    return
  }
  func.func @transform_0(%arg0: i32) -> (i32, i32, i32) {
    %c0_i32 = arith.constant 0 : i32
    %c0_i32_0 = arith.constant 0 : i32
    %c0_i32_1 = arith.constant 0 : i32
    return %arg0, %c0_i32, %c0_i32_0 : i32, i32, i32
  }
  func.func @transform_1(%arg0: i32) -> (i32, i32, i32) {
    %c0_i32 = arith.constant 0 : i32
    %c0_i32_0 = arith.constant 0 : i32
    %c0_i32_1 = arith.constant 0 : i32
    return %arg0, %c0_i32, %c0_i32_0 : i32, i32, i32
  }
  func.func @transform_2(%arg0: i32) -> (i32, i32, i32) {
    %c0_i32 = arith.constant 0 : i32
    %c0_i32_0 = arith.constant 0 : i32
    %c0_i32_1 = arith.constant 0 : i32
    return %arg0, %c0_i32, %c0_i32_0 : i32, i32, i32
  }
  func.func @transform_3(%arg0: i32) -> (i32, i32, i32) {
    %c0_i32 = arith.constant 0 : i32
    %c0_i32_0 = arith.constant 0 : i32
    %c0_i32_1 = arith.constant 0 : i32
    return %arg0, %c0_i32, %c0_i32_0 : i32, i32, i32
  }
}

</mosaic_0001>

<bundles_post_ra>
// kernel: tpu_custom_call.1
= control target key start
LH: loop header
LB: loop body
LE: loop exit
PB: predicated region body
PF: predicated region fallthrough
CT: control target
= control target key end

     0   :  { %8 = vsyncpa [#allocation3], 0  ;;  %s372_s0 = inlined_call_operand.hbm [shape: f32[8,2,32], index: 0, kind: input, shape index: {}]   ;;  %s373_s1 = inlined_call_operand.hbm [shape: f32[8,1,32], index: 1, kind: input, shape index: {}]   ;;  %s374_s2 = inlined_call_operand.hbm [shape: u32[8,2,32], index: 2, kind: input, shape index: {}]   ;;  %s375_s3 = inlined_call_operand.hbm [shape: f32[8,2,32], index: 3, kind: output, shape index: {}]  }
   0x1   :  { %9 = vsyncpa [#allocation6], 0  ;;  %s28_s14 = sshll.u32 %s373_s1, 4  ;;  %s29_s14 = int_to_ptr.hbm [resolvable:$true] %s28_s14 }
   0x2   :  { %10 = vsyncpa [#allocation4], 0  ;;  %s314_s15 = smov [#allocation5]   ;;  %s15_s19 = sshll.u32 %s372_s0, 4  ;;  %s16_s19 = int_to_ptr.hbm [resolvable:$true] %s15_s19 }
   0x3   :  { %s30_s16 = sshll.u32 %s314_s15, 4  ;;  %s315_s20 = smov 16   ;;  %s31_s16 = int_to_ptr.vmem [resolvable:$true] %s30_s16 }
   0x4   :  { %s316_s21 = smov 1   ;;  %s317_s22 = smov [#allocation2]  }
   0x5   :  { %36 = dma.hbm_to_vmem [thread:$0]  %s29_s14, 128, %s31_s16, [#allocation6], %s315_s20, %s315_s20, %s316_s21  }
   0x6   :  { %s17_s23 = sshll.u32 %s317_s22, 4  ;;  %s318_s24 = smov 32   ;;  %s18_s23 = int_to_ptr.vmem [resolvable:$true] %s17_s23 }
   0x7   :  { %s319_s25 = smov 2   ;;  %s41_s27 = sshll.u32 %s374_s2, 4  ;;  %s42_s27 = int_to_ptr.hbm [resolvable:$true] %s41_s27 }
   0x8   :  { %23 = dma.hbm_to_vmem [thread:$0]  %s16_s19, 256, %s18_s23, [#allocation3], %s318_s24, %s318_s24, %s319_s25  }
   0x9   :  { %s320_s28 = smov [#allocation7]  }
   0xa   :  { %s43_s0 = sshll.u32 %s320_s28, 4  ;;  %s44_s0 = int_to_ptr.vmem [resolvable:$true] %s43_s0 }
   0xb   :  { %49 = dma.hbm_to_vmem [thread:$0]  %s42_s27, 256, %s44_s0, [#allocation6], %s318_s24, %s318_s24, %s319_s25  }
   0xc   :  { %308 = dma.done.wait [#allocation3], 256  }
   0xd   :  { %309 = vsyncadd [#allocation3], 4294967040 }
   0xe   :  { %310 = dma.done.wait [#allocation6], 384  }
   0xf   :  { %311 = vsyncadd [#allocation6], 4294966912  ;;  %v62_v0 = vld [vmem:[#allocation2] sm:$0x3]  ;;  %v204_v1 = vld [vmem:[#allocation5] ss:$0 sm:$0xff] }
  0x10   :  { %v110_v2 = vld [vmem:[#allocation7] sm:$0x3]  ;;  %v63_v3 = vld [vmem:[#allocation2 + $0x2] sm:$0x3]  ;;  %v102_v4 = vadd.f32 %v204_v1, %v62_v0  ;;  %v205_v6 = vld [vmem:[#allocation5 + $0x1] ss:$0 sm:$0xff] }
  0x11   :  { %v187_v5 = vxor.u32 2147483648, %v110_v2  ;;  %v111_v7 = vld [vmem:[#allocation7 + $0x2] sm:$0x3]  ;;  %vm158_vm0 = vcmask 254976   ;;  %v64_v9 = vld [vmem:[#allocation2 + $0x4] sm:$0x3]  ;;  %v103_v10 = vadd.f32 %v205_v6, %v63_v3 }
  0x12   :  { %v188_v8 = vxor.u32 2147483648, %v111_v7  ;;  %v206_v11 = vld [vmem:[#allocation5 + $0x2] ss:$0 sm:$0xff]  ;;  %v112_v12 = vld [vmem:[#allocation7 + $0x4] sm:$0x3]  ;;  %v321_v13 = vmov 0.0  }
  0x13   :  { %vm120_vm1 = vcmp.lt.s32.totalorder %v187_v5, 1288490189  ;;  %v189_v15 = vxor.u32 2147483648, %v112_v12  ;;  %v65_v16 = vld [vmem:[#allocation2 + $0x6] sm:$0x3]  ;;  %v104_v19 = vadd.f32 %v206_v11, %v64_v9  ;;  %s322_s2 = smov [#allocation8]  }
  0x14   :  { %v142_v14 = vsel %vm120_vm1, 1.25, %v321_v13  ;;  %vm123_vm2 = vcmp.lt.s32.totalorder %v188_v8, 1288490189  ;;  %v207_v20 = vld [vmem:[#allocation5 + $0x3] ss:$0 sm:$0xff]  ;;  %s171_s29 = sshll.u32 %s322_s2, 4  ;;  %s172_s29 = int_to_ptr.vmem [resolvable:$true] %s171_s29 }
  0x15   :  { %v150_v17 = vmul.f32 %v142_v14, %v102_v4  ;;  %v143_v18 = vsel %vm123_vm2, 1.25, %v321_v13  ;;  %vm126_vm3 = vcmp.lt.s32.totalorder %v189_v15, 1288490189  ;;  %v113_v22 = vld [vmem:[#allocation7 + $0x6] sm:$0x3]  ;;  %v105_v25 = vadd.f32 %v207_v20, %v65_v16  ;;  %s173_s5 = sshll.u32 %s375_s3, 4  ;;  %s174_s5 = int_to_ptr.hbm [resolvable:$true] %s173_s5 }
  0x16   :  { %v151_v21 = vmul.f32 %v143_v18, %v103_v10  ;;  %v66_v23 = vld [vmem:[#allocation2 + $0x8] sm:$0x3]  ;;  %v144_v24 = vsel %vm126_vm3, 1.25, %v321_v13  ;;  %v190_v26 = vxor.u32 2147483648, %v113_v22  ;;  %v208_v28 = vld [vmem:[#allocation5 + $0x4] ss:$0 sm:$0xff] }
  0x17   :  { %159 = vst.msk [vmem:[#allocation8] sm:$0x3] %vm158_vm0, %v150_v17  ;;  %v152_v27 = vmul.f32 %v144_v24, %v104_v19  ;;  %v114_v29 = vld [vmem:[#allocation7 + $0x8] sm:$0x3]  ;;  %v67_v31 = vld [vmem:[#allocation2 + $0xa] sm:$0x3]  ;;  %v106_v33 = vadd.f32 %v208_v28, %v66_v23 }
  0x18   :  { %160 = vst.msk [vmem:[#allocation8 + $0x2] sm:$0x3] %vm158_vm0, %v151_v21  ;;  %vm129_vm4 = vcmp.lt.s32.totalorder %v190_v26, 1288490189  ;;  %v191_v30 = vxor.u32 2147483648, %v114_v29 }
  0x19   :  { %161 = vst.msk [vmem:[#allocation8 + $0x4] sm:$0x3] %vm158_vm0, %v152_v27  ;;  %v145_v32 = vsel %vm129_vm4, 1.25, %v321_v13  ;;  %v209_v35 = vld [vmem:[#allocation5 + $0x5] ss:$0 sm:$0xff] }
  0x1a   :  { %v153_v34 = vmul.f32 %v145_v32, %v105_v25  ;;  %vm132_vm5 = vcmp.lt.s32.totalorder %v191_v30, 1288490189  ;;  %v115_v36 = vld [vmem:[#allocation7 + $0xa] sm:$0x3]  ;;  %v68_v39 = vld [vmem:[#allocation2 + $0xc] sm:$0x3]  ;;  %v107_v41 = vadd.f32 %v209_v35, %v67_v31 }
  0x1b   :  { %v146_v37 = vsel %vm132_vm5, 1.25, %v321_v13  ;;  %v192_v38 = vxor.u32 2147483648, %v115_v36  ;;  %v210_v42 = vld [vmem:[#allocation5 + $0x6] ss:$0 sm:$0xff]  ;;  %v116_v43 = vld [vmem:[#allocation7 + $0xc] sm:$0x3] }
  0x1c   :  { %162 = vst.msk [vmem:[#allocation8 + $0x6] sm:$0x3] %vm158_vm0, %v153_v34  ;;  %v154_v40 = vmul.f32 %v146_v37, %v106_v33  ;;  %v193_v44 = vxor.u32 2147483648, %v116_v43  ;;  %v69_v45 = vld [vmem:[#allocation2 + $0xe] sm:$0x3]  ;;  %v108_v47 = vadd.f32 %v210_v42, %v68_v39 }
  0x1d   :  { %vm135_vm6 = vcmp.lt.s32.totalorder %v192_v38, 1288490189  ;;  %v211_v49 = vld [vmem:[#allocation5 + $0x7] ss:$0 sm:$0xff]  ;;  %v117_v50 = vld [vmem:[#allocation7 + $0xe] sm:$0x3] }
  0x1e   :  { %163 = vst.msk [vmem:[#allocation8 + $0x8] sm:$0x3] %vm158_vm0, %v154_v40  ;;  %v147_v46 = vsel %vm135_vm6, 1.25, %v321_v13  ;;  %vm138_vm7 = vcmp.lt.s32.totalorder %v193_v44, 1288490189  ;;  %v194_v52 = vxor.u32 2147483648, %v117_v50  ;;  %v109_v54 = vadd.f32 %v211_v49, %v69_v45 }
  0x1f   :  { %v155_v48 = vmul.f32 %v147_v46, %v107_v41  ;;  %v148_v51 = vsel %vm138_vm7, 1.25, %v321_v13 }
  0x20   :  { %v156_v53 = vmul.f32 %v148_v51, %v108_v47  ;;  %vm141_vm8 = vcmp.lt.s32.totalorder %v194_v52, 1288490189 }
  0x21   :  { %164 = vst.msk [vmem:[#allocation8 + $0xa] sm:$0x3] %vm158_vm0, %v155_v48  ;;  %v149_v55 = vsel %vm141_vm8, 1.25, %v321_v13 }
  0x22   :  { %165 = vst.msk [vmem:[#allocation8 + $0xc] sm:$0x3] %vm158_vm0, %v156_v53  ;;  %v157_v56 = vmul.f32 %v149_v55, %v109_v54 }
  0x24   :  { %166 = vst.msk [vmem:[#allocation8 + $0xe] sm:$0x3] %vm158_vm0, %v157_v56 }
  0x25   :  { %179 = dma.vmem_to_hbm [thread:$0]  %s172_s29, 256, %s174_s5, [#allocation4], %s318_s24, %s318_s24, %s319_s25  }
  0x26   :  { %312 = dma.done.wait [#allocation4], 256  }
  0x27   :  { %313 = vsyncadd [#allocation4], 4294967040 }
  0x28   :  { %184 = vsyncpa [#allocation3], 1 }
  0x29   :  { %185 = vsyncpa [#allocation6], 1 }
  0x2a   :  { %186 = vsyncpa [#allocation4], 1 }

</bundles_post_ra>
